<compile_context>
chip_gen: v7x
topology: tpu7x:2x2x1
jax: 0.10.0
libtpu: 0.0.40
codegen_flags: <defaults>
</compile_context>

<pallas_src>
import functools

import jax
import jax.numpy as jnp
from jax.experimental import pallas as pl
from jax.experimental.pallas import tpu as pltpu


# ---------------------------------------------------------------------------
# Median-of-K compare/exchange networks (pure VPU min/max, branch-free).
# ---------------------------------------------------------------------------
def _cx(v, i, j):
    """Compare-exchange: v[i] <- min(v[i], v[j]), v[j] <- max(v[i], v[j])."""
    lo = jnp.minimum(v[i], v[j])
    hi = jnp.maximum(v[i], v[j])
    v[i] = lo
    v[j] = hi


def _median9_paeth(vals):
    """Median of 9 via Paeth's 19-compare-exchange network (Graphics Gems)."""
    v = list(vals)
    _cx(v, 1, 2); _cx(v, 4, 5); _cx(v, 7, 8)
    _cx(v, 0, 1); _cx(v, 3, 4); _cx(v, 6, 7)
    _cx(v, 1, 2); _cx(v, 4, 5); _cx(v, 7, 8)
    _cx(v, 0, 3); _cx(v, 5, 8); _cx(v, 4, 7)
    _cx(v, 3, 6); _cx(v, 1, 4); _cx(v, 2, 5)
    _cx(v, 4, 7); _cx(v, 4, 2); _cx(v, 6, 4)
    _cx(v, 4, 2)
    return v[4]


def _drop_min_max(vals):
    """Return vals minus one copy of its min and one copy of its max.

    Pairing + two tournaments: ~3n/2 compare-exchanges instead of the 2n-3 of
    a double bubble pass.  Every op is a compare-exchange, so the multiset is
    preserved; position 0 provably holds the global min and position n-1 the
    global max when we drop them.
    """
    v = list(vals)
    n = len(v)
    assert n >= 3
    for i in range(0, n - 1, 2):          # pair: min -> even slot, max -> odd
        _cx(v, i, i + 1)
    evens = list(range(0, n, 2))          # global-min candidates
    odds = list(range(1, n, 2))           # global-max candidates
    if n % 2 == 1:
        odds.append(n - 1)                # unpaired leftover is both
    for q in evens[1:]:                   # min tournament -> position 0
        _cx(v, evens[0], q)
    for q in odds[:-1]:                   # max tournament -> position n-1
        _cx(v, q, odds[-1])
    drop = (evens[0], odds[-1])
    return [v[i] for i in range(n) if i not in drop]


def _median_of_taps(vals):
    """(Lower) median of an odd number of equally shaped arrays."""
    k = len(vals)
    assert k % 2 == 1
    if k == 1:
        return vals[0]
    if k == 9:
        return _median9_paeth(vals)
    # Forgetful selection: keep a working set of k//2 + 2 values; its min and
    # max are provably not the overall median, so discard them and pull in the
    # next tap.  Ends with 3 values whose median is the overall median.
    m = k // 2
    work = list(vals[: m + 2])
    for nxt in vals[m + 2:]:
        work = _drop_min_max(work)
        work.append(nxt)
    work = _drop_min_max(work)            # 3 values -> 1 (their median)
    assert len(work) == 1
    return work[0]


# ---------------------------------------------------------------------------
# Pallas kernel: one grid step = RS output rows of one TB-lane block.
#   x_ref: (Hc + kh - 1, W + kw - 1, TB) zero-padded plane block; its block
#          index ignores the row-strip grid axis, so it is DMA'd once per BC
#          block and revisited across all row strips.
#   o_ref: (RS, W, TB) output row strip.
# ---------------------------------------------------------------------------
def _median_blur_kernel(x_ref, o_ref, *, kh, kw, RS, W, cdtype):
    r0 = pl.program_id(1) * RS
    if RS > 1:
        r0 = pl.multiple_of(r0, RS)
    rows = RS + kh - 1
    # Hoist the dx (column / sublane) shift: kw shifted slabs loaded once per
    # strip; the kh*kw taps are then free leading-dim (row) slices of them.
    cols = [x_ref[pl.ds(r0, rows), dx:dx + W, :].astype(cdtype)
            for dx in range(kw)]
    taps = [cols[dx][dy:dy + RS] for dy in range(kh) for dx in range(kw)]
    o_ref[...] = _median_of_taps(taps).astype(o_ref.dtype)


# ---------------------------------------------------------------------------
# Wrapper
# ---------------------------------------------------------------------------
def _round_up(a, b):
    return -(-a // b) * b


def _sublane(dtype):
    return max(8, 32 // jnp.dtype(dtype).itemsize)


def _vmem_budget():
    """(usable budget, vmem_limit_bytes) derived from the chip's VMEM size."""
    phys = 64 * 1024 * 1024                      # v7x-safe fallback
    try:
        phys = int(pltpu.get_tpu_info().vmem_capacity_bytes)
    except Exception:
        pass
    limit = min((phys * 3) // 4, 100 * 1024 * 1024)
    budget = (limit * 3) // 4
    return budget, limit


def _compute_dtype(dtype):
    """f32 compute for bf16/f16 on pre-v6 parts (no native bf16 VPU)."""
    if dtype == jnp.bfloat16 or dtype == jnp.float16:
        kind = ""
        try:
            kind = jax.devices()[0].device_kind.lower()
        except Exception:
            pass
        if any(v in kind for v in ("v2", "v3", "v4", "v5")):
            return jnp.dtype(jnp.float32)
    return jnp.dtype(dtype)


def median_blur(x: jnp.ndarray, kernel_size=(3, 3)) -> jnp.ndarray:
    """Median blur of x with shape (B, C, H, W): zero padding, lower median."""
    if x.ndim != 4:
        raise ValueError(f"expected (B, C, H, W), got {x.shape}")
    kh, kw = int(kernel_size[0]), int(kernel_size[1])
    if kh < 1 or kw < 1 or kh % 2 == 0 or kw % 2 == 0:
        raise ValueError(f"kernel_size must be odd and >= 1, got {kernel_size}")

    B, C, H, W = x.shape
    ph, pw = (kh - 1) // 2, (kw - 1) // 2
    Wp = W + 2 * pw
    BC = B * C
    in_dt = x.dtype
    c_dt = _compute_dtype(in_dt)
    in_sz = jnp.dtype(in_dt).itemsize
    c_sz = jnp.dtype(c_dt).itemsize
    sub_in = _sublane(in_dt)
    sub_c = _sublane(c_dt)
    lane = 128
    budget, limit = _vmem_budget()
    # Live arrays inside the CE network (9 for Paeth, k//2+2 for forgetful,
    # plus slack for the hoisted column slabs).
    live = 10 if kh * kw == 9 else (kh * kw) // 2 + 4

    def plan(tb):
        """Row-strip size, grid extents and tile-padded VMEM need for tb lanes."""
        lane_tiles = _round_up(tb, lane) // lane
        w_tiles = _round_up(max(W, 1), sub_c) // sub_c
        # Keep the CE working set roughly inside the 64 x 4KiB vreg file.
        rs = max(1, 48 // (live * w_tiles * lane_tiles))
        rs = min(rs, H)
        n_bc = _round_up(BC, tb) // tb
        if n_bc < 2 and H >= 2:
            rs = min(rs, -(-H // 2))      # >= 2 grid steps for megacore / v7x
        n_h = -(-H // rs)
        hc = n_h * rs
        hp = hc + 2 * ph
        in_blk = hp * _round_up(Wp, sub_in) * _round_up(tb, lane) * in_sz
        out_blk = rs * _round_up(W, sub_in) * _round_up(tb, lane) * in_sz
        tmp = live * rs * _round_up(W, sub_c) * _round_up(tb, lane) * c_sz
        need = 2 * in_blk + 2 * out_blk + tmp + (1 << 20)
        return rs, n_bc, n_h, hc, hp, need

    # Lane-block (TB) selection: BC on lanes, in multiples of 128 when BC>=128
    # (last block dim must be 128-divisible or the full dim).
    if BC >= lane:
        bc128 = _round_up(BC, lane) // lane
        f = max(1, bc128 // 2) if bc128 >= 2 else 1   # keep >= 2 BC blocks
        while f > 1 and plan(f * lane)[5] > budget:
            f = max(1, f // 2)
        TB = f * lane
    else:
        TB = BC
    RS, n_bc, n_h, Hc, Hp, need = plan(TB)
    BCp = _round_up(BC, TB)

    if need > budget:
        # TODO(synk): planes too large to hold one (padded) plane block in VMEM
        # need manual halo DMA (pl.ANY + make_async_copy) row/col tiling; fall
        # back to the pure-JAX formulation for those shapes.
        return _median_blur_ref(x, (kh, kw))

    # Layout plumbing: (B,C,H,W) -> (H, W, BC) with BC on lanes; the zero halo
    # and the H / BC round-up padding are folded into a single pad.
    xt = jnp.transpose(x.reshape(BC, H, W), (1, 2, 0))
    xt = jnp.pad(xt, ((ph, ph + (Hc - H)), (pw, pw), (0, BCp - BC)))

    kernel = functools.partial(_median_blur_kernel, kh=kh, kw=kw, RS=RS, W=W,
                               cdtype=c_dt)
    out = pl.pallas_call(
        kernel,
        out_shape=jax.ShapeDtypeStruct((Hc, W, BCp), in_dt),
        grid=(n_bc, n_h),
        in_specs=[pl.BlockSpec((Hp, Wp, TB), lambda b, h: (0, 0, b))],
        out_specs=pl.BlockSpec((RS, W, TB), lambda b, h: (h, 0, b)),
        compiler_params=pltpu.CompilerParams(
            dimension_semantics=("parallel", "parallel"),
            vmem_limit_bytes=int(limit),
        ),
    )(xt)

    out = out[:H, :, :BC]
    return jnp.transpose(out, (2, 0, 1)).reshape(B, C, H, W)


class MedianBlur:
    """Module-style wrapper mirroring the PyTorch nn.Module."""

    def __init__(self, kernel_size):
        self.kernel_size = tuple(kernel_size)

    def __call__(self, x):
        return median_blur(x, self.kernel_size)


# ---------------------------------------------------------------------------
# Pure-JAX reference mirroring the torch implementation (zero pad + median).
# ---------------------------------------------------------------------------
def _median_blur_ref(x: jnp.ndarray, kernel_size) -> jnp.ndarray:
    B, C, H, W = x.shape
    kh, kw = kernel_size
    ph, pw = (kh - 1) // 2, (kw - 1) // 2
    xp = jnp.pad(x, ((0, 0), (0, 0), (ph, ph), (pw, pw)))
    taps = [xp[:, :, dy:dy + H, dx:dx + W]
            for dy in range(kh) for dx in range(kw)]
    feats = jnp.stack(taps, axis=2)             # (B, C, K, H, W)
    srt = jnp.sort(feats, axis=2)
    return srt[:, :, (kh * kw - 1) // 2]        # lower median == torch.median


if __name__ == "__main__":
    key = jax.random.PRNGKey(0)
    B, C, H, W = 2, 4, 16, 16
    x = jax.random.uniform(key, (B, C, H, W), dtype=jnp.float32)

    # 3x3 path (Paeth median-of-9 network).
    blur = MedianBlur((3, 3))
    out = jax.block_until_ready(blur(x))
    assert out.shape == (B, C, H, W)
    ref = _median_blur_ref(x, (3, 3))
    assert jnp.allclose(out, ref, atol=1e-6), "3x3 mismatch vs reference"

    # Generic odd-size path (forgetful selection with pairing drop-min/max).
    out5 = jax.block_until_ready(median_blur(x, (5, 5)))
    ref5 = _median_blur_ref(x, (5, 5))
    assert jnp.allclose(out5, ref5, atol=1e-6), "5x5 mismatch vs reference"

    # bf16 path (kept in bf16 on v6e/v7x, upcast to f32 on older parts).
    xb = x.astype(jnp.bfloat16)
    outb = jax.block_until_ready(median_blur(xb, (3, 3)))
    refb = _median_blur_ref(xb, (3, 3))
    assert jnp.allclose(outb.astype(jnp.float32), refb.astype(jnp.float32)), \
        "bf16 3x3 mismatch vs reference"

    print("KERNEL_OK")
</pallas_src>

<mosaic_0001>
module attributes {stable_mosaic.version = 11 : i64} {
  func.func @_median_blur_kernel(%arg0: i32, %arg1: i32, %arg2: memref<18x18x8xf32, #tpu.memory_space<vmem>>, %arg3: memref<2x16x8xf32, #tpu.memory_space<vmem>>) attributes {dimension_semantics = [#tpu.dimension_semantics<parallel>, #tpu.dimension_semantics<parallel>], iteration_bounds = array<i64: 1, 8>, scalar_prefetch = 0 : i64, scratch_operands = 0 : i64, tpu.core_type = #tpu.core_type<tc>, window_params = [{transform_indices = @transform_0, window_bounds = array<i64: 18, 18, 8>}, {transform_indices = @transform_1, window_bounds = array<i64: 2, 16, 8>}]} {
    %c2_i32 = arith.constant 2 : i32
    %0 = arith.muli %arg1, %c2_i32 : i32
    %1 = tpu.assume_multiple %0, 2 : i32
    %2 = arith.index_cast %1 : i32 to index
    %c0 = arith.constant 0 : index
    %c0_0 = arith.constant 0 : index
    %3 = vector.load %arg2[%2, %c0, %c0_0] : memref<18x18x8xf32, #tpu.memory_space<vmem>>, vector<4x16x8xf32>
    %4 = arith.index_cast %1 : i32 to index
    %c1 = arith.constant 1 : index
    %c0_1 = arith.constant 0 : index
    %5 = vector.load %arg2[%4, %c1, %c0_1] : memref<18x18x8xf32, #tpu.memory_space<vmem>>, vector<4x16x8xf32>
    %6 = arith.index_cast %1 : i32 to index
    %c2 = arith.constant 2 : index
    %c0_2 = arith.constant 0 : index
    %7 = vector.load %arg2[%6, %c2, %c0_2] : memref<18x18x8xf32, #tpu.memory_space<vmem>>, vector<4x16x8xf32>
    %8 = vector.extract_strided_slice %3 {offsets = [0, 0, 0], sizes = [2, 16, 8], strides = [1, 1, 1]} : vector<4x16x8xf32> to vector<2x16x8xf32>
    %9 = vector.extract_strided_slice %5 {offsets = [0, 0, 0], sizes = [2, 16, 8], strides = [1, 1, 1]} : vector<4x16x8xf32> to vector<2x16x8xf32>
    %10 = vector.extract_strided_slice %7 {offsets = [0, 0, 0], sizes = [2, 16, 8], strides = [1, 1, 1]} : vector<4x16x8xf32> to vector<2x16x8xf32>
    %11 = vector.extract_strided_slice %3 {offsets = [1, 0, 0], sizes = [2, 16, 8], strides = [1, 1, 1]} : vector<4x16x8xf32> to vector<2x16x8xf32>
    %12 = vector.extract_strided_slice %5 {offsets = [1, 0, 0], sizes = [2, 16, 8], strides = [1, 1, 1]} : vector<4x16x8xf32> to vector<2x16x8xf32>
    %13 = vector.extract_strided_slice %7 {offsets = [1, 0, 0], sizes = [2, 16, 8], strides = [1, 1, 1]} : vector<4x16x8xf32> to vector<2x16x8xf32>
    %14 = vector.extract_strided_slice %3 {offsets = [2, 0, 0], sizes = [2, 16, 8], strides = [1, 1, 1]} : vector<4x16x8xf32> to vector<2x16x8xf32>
    %15 = vector.extract_strided_slice %5 {offsets = [2, 0, 0], sizes = [2, 16, 8], strides = [1, 1, 1]} : vector<4x16x8xf32> to vector<2x16x8xf32>
    %16 = vector.extract_strided_slice %7 {offsets = [2, 0, 0], sizes = [2, 16, 8], strides = [1, 1, 1]} : vector<4x16x8xf32> to vector<2x16x8xf32>
    %17 = arith.minimumf %9, %10 : vector<2x16x8xf32>
    %18 = arith.maximumf %9, %10 : vector<2x16x8xf32>
    %19 = arith.minimumf %12, %13 : vector<2x16x8xf32>
    %20 = arith.maximumf %12, %13 : vector<2x16x8xf32>
    %21 = arith.minimumf %15, %16 : vector<2x16x8xf32>
    %22 = arith.maximumf %15, %16 : vector<2x16x8xf32>
    %23 = arith.minimumf %8, %17 : vector<2x16x8xf32>
    %24 = arith.maximumf %8, %17 : vector<2x16x8xf32>
    %25 = arith.minimumf %11, %19 : vector<2x16x8xf32>
    %26 = arith.maximumf %11, %19 : vector<2x16x8xf32>
    %27 = arith.minimumf %14, %21 : vector<2x16x8xf32>
    %28 = arith.maximumf %14, %21 : vector<2x16x8xf32>
    %29 = arith.minimumf %24, %18 : vector<2x16x8xf32>
    %30 = arith.maximumf %24, %18 : vector<2x16x8xf32>
    %31 = arith.minimumf %26, %20 : vector<2x16x8xf32>
    %32 = arith.maximumf %26, %20 : vector<2x16x8xf32>
    %33 = arith.minimumf %28, %22 : vector<2x16x8xf32>
    %34 = arith.maximumf %28, %22 : vector<2x16x8xf32>
    %35 = arith.maximumf %23, %25 : vector<2x16x8xf32>
    %36 = arith.minimumf %32, %34 : vector<2x16x8xf32>
    %37 = arith.minimumf %31, %33 : vector<2x16x8xf32>
    %38 = arith.maximumf %31, %33 : vector<2x16x8xf32>
    %39 = arith.maximumf %35, %27 : vector<2x16x8xf32>
    %40 = arith.maximumf %29, %37 : vector<2x16x8xf32>
    %41 = arith.minimumf %30, %36 : vector<2x16x8xf32>
    %42 = arith.minimumf %40, %38 : vector<2x16x8xf32>
    %43 = arith.minimumf %42, %41 : vector<2x16x8xf32>
    %44 = arith.maximumf %42, %41 : vector<2x16x8xf32>
    %45 = arith.maximumf %39, %43 : vector<2x16x8xf32>
    %46 = arith.minimumf %45, %44 : vector<2x16x8xf32>
    %c0_3 = arith.constant 0 : index
    %c0_4 = arith.constant 0 : index
    %c0_5 = arith.constant 0 : index
    %47 = vector.load %arg3[%c0_3, %c0_4, %c0_5] : memref<2x16x8xf32, #tpu.memory_space<vmem>>, vector<2x16x8xf32>
    tpu.vector_store %arg3[%c0_3, %c0_4, %c0_5], %46 {strides = array<i32>} : memref<2x16x8xf32, #tpu.memory_space<vmem>>, vector<2x16x8xf32>,
    return
  }
  func.func @transform_0(%arg0: i32, %arg1: i32) -> (i32, i32, i32) {
    %c0_i32 = arith.constant 0 : i32
    %c0_i32_0 = arith.constant 0 : i32
    %c0_i32_1 = arith.constant 0 : i32
    return %c0_i32, %c0_i32_0, %arg0 : i32, i32, i32
  }
  func.func @transform_1(%arg0: i32, %arg1: i32) -> (i32, i32, i32) {
    %c0_i32 = arith.constant 0 : i32
    %c0_i32_0 = arith.constant 0 : i32
    return %arg1, %c0_i32, %arg0 : i32, i32, i32
  }
}

</mosaic_0001>

<bundles_post_ra>
// kernel: tpu_custom_call.1
= control target key start
LH: loop header
LB: loop body
LE: loop exit
PB: predicated region body
PF: predicated region fallthrough
CT: control target
= control target key end

     0   :  { %s422_s6 = smov 0   ;;  %s424_s7 = smov 0   ;;  %s535_s0 = inlined_call_operand.vmem [shape: f32[18,18,8], index: 0, kind: input, shape index: {}]   ;;  %s536_s1 = inlined_call_operand.vmem [shape: f32[16,16,8], index: 1, kind: output, shape index: {}]  }
   0x1   :  { %s426_s8 = smov 0  }
   0x2 LB: > { %s20_s9 = sadd.s32 1, %s406_s7  ;;  %p355_p0 = scmp.ge.s32.totalorder %s410_s8, 1  ;;  %s410_s8 = sphi %s426_s8, %s11_s8   ;;  %s406_s7 = sphi %s424_s7, %s539_s7   ;;  %s402_s6 = sphi %s422_s6, %s538_s6  }
   0x3   : > { %p21_p1 = scmp.ge.s32.totalorder %s20_s9, 8  ;;  %p100_p2 = scmp.lt.s32.totalorder %s410_s8, 9 }
   0x5   : > { %s541_s9 = smov (%p21_p1, %s20_s9), 0  ;;  %p101_p3 = pnand %p355_p0, %p100_p2 }
   0x6   : > { %s360_s10 = smul.u32 (!%p101_p3), 48, %s402_s6  ;;  %s356_s14 = sshll.u32 (!%p101_p3), %s402_s6, 1  ;;  %vm260_vm0 = vcmask (!%p101_p3), 64512  }
   0x7   : > { %104 = sbr.rel (%p101_p3) target bundleno = 46 (0x2e), region = 24  ;;  %p474_p4 = scmp.lt.s32.totalorder (!%p101_p3), %s356_s14, 15 }
   0x8   : > { %s446_s13 = scalar_lea.vmem (!%p101_p3), %s535_s0, %s360_s10 }
   0x9   : > { %v140_v0 = vld [vmem:[%s446_s13] sm:$0xff] (!%p101_p3)  ;;  %v142_v1 = vld [vmem:[%s446_s13 + $0x18] sm:$0xff] (!%p101_p3)  ;;  %v144_v8 = vld [vmem:[%s446_s13 + $0x30] sm:$0xff] (!%p101_p3) }
   0xa   : > { %v148_v2 = vld [vmem:[%s446_s13 + $0x1] sm:$0xff] (!%p101_p3)  ;;  %v150_v3 = vld [vmem:[%s446_s13 + $0x19] sm:$0xff] (!%p101_p3)  ;;  %v152_v4 = vld [vmem:[%s446_s13 + $0x31] sm:$0xff] (!%p101_p3) }
   0xb   : > { %v156_v5 = vld [vmem:[%s446_s13 + $0x2] sm:$0xff] (!%p101_p3)  ;;  %v158_v6 = vld [vmem:[%s446_s13 + $0x1a] sm:$0xff] (!%p101_p3)  ;;  %v160_v7 = vld [vmem:[%s446_s13 + $0x32] sm:$0xff] (!%p101_p3) }
   0xc   : > { %v164_v9 = vmin.f32 (!%p101_p3), %v148_v2, %v156_v5  ;;  %v166_v10 = vmin.f32 (!%p101_p3), %v150_v3, %v158_v6  ;;  %v170_v11 = vmax.f32 (!%p101_p3), %v150_v3, %v158_v6  ;;  %v168_v12 = vmax.f32 (!%p101_p3), %v148_v2, %v156_v5  ;;  %v149_v15 = vld [vmem:[%s446_s13 + $0x9] sm:$0xff] (!%p101_p3)  ;;  %v151_v16 = vld [vmem:[%s446_s13 + $0x21] sm:$0xff] (!%p101_p3)  ;;  %v153_v25 = vld [vmem:[%s446_s13 + $0x39] sm:$0xff] (!%p101_p3) }
   0xd   : > { %v172_v13 = vmin.f32 (!%p101_p3), %v152_v4, %v160_v7  ;;  %v174_v14 = vmax.f32 (!%p101_p3), %v152_v4, %v160_v7  ;;  %v157_v21 = vld [vmem:[%s446_s13 + $0xa] sm:$0xff] (!%p101_p3)  ;;  %v159_v22 = vld [vmem:[%s446_s13 + $0x22] sm:$0xff] (!%p101_p3)  ;;  %v161_v26 = vld [vmem:[%s446_s13 + $0x3a] sm:$0xff] (!%p101_p3) }
   0xe   : > { %v180_v17 = vmin.f32 %v140_v0, %v164_v9  ;;  %v460_v18 = vmin.f32 %v142_v1, %v166_v10  ;;  %v184_v19 = vmax.f32 %v140_v0, %v164_v9  ;;  %v186_v20 = vmax.f32 %v142_v1, %v166_v10  ;;  %v141_v35 = vld [vmem:[%s446_s13 + $0x8] sm:$0xff]  ;;  %v143_v36 = vld [vmem:[%s446_s13 + $0x20] sm:$0xff]  ;;  %v145_v38 = vld [vmem:[%s446_s13 + $0x38] sm:$0xff]  ;;  %s543_s14 = smov (!%p474_p4, %s356_s14), 15 }
   0xf   : > { %v464_v23 = vmin.f32 %v144_v8, %v172_v13  ;;  %v190_v24 = vmax.f32 %v144_v8, %v172_v13  ;;  %v165_v29 = vmin.f32 %v149_v15, %v157_v21  ;;  %v167_v30 = vmin.f32 %v151_v16, %v159_v22  ;;  %v154_v42 = vld [vmem:[%s446_s13 + $0x49] sm:$0xff]  ;;  %s363_s16 = sshll.u32 %s543_s14, 4  ;;  %v155_v9 = vld [vmem:[%s446_s13 + $0x51] sm:$0xff] }
  0x10   : > { %v468_v27 = vmin.f32 %v186_v20, %v170_v11  ;;  %v470_v28 = vmax.f32 %v186_v20, %v170_v11  ;;  %v196_v31 = vmin.f32 %v184_v19, %v168_v12  ;;  %v200_v32 = vmax.f32 %v184_v19, %v168_v12  ;;  %v162_v43 = vld [vmem:[%s446_s13 + $0x4a] sm:$0xff]  ;;  %v163_v10 = vld [vmem:[%s446_s13 + $0x52] sm:$0xff]  ;;  %s511_s19 = scalar_lea.vmem %s536_s1, %s363_s16 }
  0x11   : > { %v478_v33 = vmin.f32 %v190_v24, %v174_v14  ;;  %v206_v34 = vmax.f32 %v190_v24, %v174_v14  ;;  %v212_v37 = vmax.f32 %v180_v17, %v460_v18  ;;  %v169_v39 = vmax.f32 %v149_v15, %v157_v21  ;;  %v146_v55 = vld [vmem:[%s446_s13 + $0x48] sm:$0xff]  ;;  %v147_v20 = vld [vmem:[%s446_s13 + $0x50] sm:$0xff] }
  0x12   : > { %v171_v40 = vmax.f32 %v151_v16, %v159_v22  ;;  %v173_v41 = vmin.f32 %v153_v25, %v161_v26  ;;  %v175_v47 = vmax.f32 %v153_v25, %v161_v26  ;;  %v181_v48 = vmin.f32 %v141_v35, %v165_v29 }
  0x13   : > { %v216_v44 = vmin.f32 %v470_v28, %v206_v34  ;;  %v220_v45 = vmin.f32 %v468_v27, %v478_v33  ;;  %v224_v46 = vmax.f32 %v468_v27, %v478_v33  ;;  %v491_v49 = vmin.f32 %v143_v36, %v167_v30 }
  0x14   : > { %v185_v50 = vmax.f32 %v141_v35, %v165_v29  ;;  %v187_v51 = vmax.f32 %v143_v36, %v167_v30  ;;  %v191_v54 = vmax.f32 %v145_v38, %v173_v41  ;;  %v176_v56 = vmin.f32 %v154_v42, %v162_v43 }
  0x15   : > { %v232_v52 = vmax.f32 %v196_v31, %v220_v45  ;;  %v236_v53 = vmin.f32 %v200_v32, %v216_v44  ;;  %v228_v57 = vmax.f32 %v212_v37, %v464_v23  ;;  %v189_v1 = vmin.f32 %v145_v38, %v173_v41 }
  0x16   : > { %v197_v58 = vmin.f32 %v185_v50, %v169_v39  ;;  %v199_v59 = vmin.f32 %v187_v51, %v171_v40  ;;  %v203_v60 = vmax.f32 %v187_v51, %v171_v40  ;;  %v201_v62 = vmax.f32 %v185_v50, %v169_v39 }
  0x17   : > { %v240_v61 = vmin.f32 %v232_v52, %v224_v46  ;;  %v205_v63 = vmin.f32 %v191_v54, %v175_v47  ;;  %v207_v0 = vmax.f32 %v191_v54, %v175_v47  ;;  %v213_v2 = vmax.f32 %v181_v48, %v491_v49 }
  0x18   : > { %v178_v3 = vmax.f32 %v154_v42, %v162_v43  ;;  %v194_v4 = vmax.f32 %v146_v55, %v176_v56  ;;  %v192_v12 = vmin.f32 %v146_v55, %v176_v56  ;;  %v214_v19 = vmax.f32 %v460_v18, %v464_v23 }
  0x19   : > { %v244_v5 = vmin.f32 %v240_v61, %v236_v53  ;;  %v248_v6 = vmax.f32 %v240_v61, %v236_v53  ;;  %v217_v7 = vmin.f32 %v203_v60, %v207_v0  ;;  %v221_v8 = vmin.f32 %v199_v59, %v205_v63 }
  0x1a   : > { %v225_v11 = vmax.f32 %v199_v59, %v205_v63  ;;  %v208_v13 = vmin.f32 %v194_v4, %v178_v3  ;;  %v210_v14 = vmax.f32 %v194_v4, %v178_v3  ;;  %v177_v25 = vmin.f32 %v155_v9, %v163_v10 }
  0x1b   : > { %v252_v15 = vmax.f32 %v228_v57, %v244_v5  ;;  %v233_v16 = vmax.f32 %v197_v58, %v221_v8  ;;  %v237_v17 = vmin.f32 %v201_v62, %v217_v7  ;;  %v229_v29 = vmax.f32 %v213_v2, %v189_v1 }
  0x1c   : > { %v218_v21 = vmin.f32 %v206_v34, %v210_v14  ;;  %v222_v22 = vmin.f32 %v478_v33, %v208_v13  ;;  %v226_v24 = vmax.f32 %v478_v33, %v208_v13  ;;  %v179_v31 = vmax.f32 %v155_v9, %v163_v10 }
  0x1d   : > { %v256_v26 = vmin.f32 %v252_v15, %v248_v6  ;;  %v241_v30 = vmin.f32 %v233_v16, %v225_v11  ;;  %v195_v23 = vmax.f32 %v147_v20, %v177_v25  ;;  %v230_v37 = vmax.f32 %v214_v19, %v192_v12 }
  0x1e   : > { %v234_v32 = vmax.f32 %v468_v27, %v222_v22  ;;  %v238_v18 = vmin.f32 %v470_v28, %v218_v21  ;;  %v193_v40 = vmin.f32 %v147_v20, %v177_v25  ;;  %v215_v41 = vmax.f32 %v491_v49, %v189_v1 }
  0x1f   : > { %261 = vst.msk [vmem:[%s511_s19] sm:$0xff] %vm260_vm0, %v256_v26  ;;  %v245_v35 = vmin.f32 %v241_v30, %v237_v17  ;;  %v249_v36 = vmax.f32 %v241_v30, %v237_v17  ;;  %v209_v38 = vmin.f32 %v195_v23, %v179_v31  ;;  %v211_v39 = vmax.f32 %v195_v23, %v179_v31 }
  0x20   : > { %v242_v34 = vmin.f32 %v234_v32, %v226_v24  ;;  %v231_v51 = vmax.f32 %v215_v41, %v193_v40 }
  0x21   : > { %v253_v33 = vmax.f32 %v229_v29, %v245_v35  ;;  %v219_v27 = vmin.f32 %v207_v0, %v211_v39  ;;  %v223_v28 = vmin.f32 %v205_v63, %v209_v38  ;;  %v227_v45 = vmax.f32 %v205_v63, %v209_v38 }
  0x22   : > { %v246_v42 = vmin.f32 %v242_v34, %v238_v18  ;;  %v250_v43 = vmax.f32 %v242_v34, %v238_v18 }
  0x23   : > { %v257_v44 = vmin.f32 %v253_v33, %v249_v36  ;;  %v235_v47 = vmax.f32 %v199_v59, %v223_v28  ;;  %v239_v48 = vmin.f32 %v203_v60, %v219_v27 }
  0x24   : > { %v254_v46 = vmax.f32 %v230_v37, %v246_v42 }
  0x25   : > { %262 = vst.msk [vmem:[%s511_s19 + $0x8] sm:$0xff] %vm260_vm0, %v257_v44  ;;  %v243_v52 = vmin.f32 %v235_v47, %v227_v45 }
  0x26   : > { %v258_v50 = vmin.f32 %v254_v46, %v250_v43 }
  0x27   : > { %v247_v53 = vmin.f32 %v243_v52, %v239_v48  ;;  %v251_v54 = vmax.f32 %v243_v52, %v239_v48 }
  0x28   : > { %263 = vst.msk [vmem:[%s511_s19 + $0x10] sm:$0xff] %vm260_vm0, %v258_v50 }
  0x29   : > { %v255_v49 = vmax.f32 %v231_v51, %v247_v53 }
  0x2b   : > { %v259_v55 = vmin.f32 %v255_v49, %v251_v54 }
  0x2d   : > { %264 = vst.msk [vmem:[%s511_s19 + $0x18] sm:$0xff] %vm260_vm0, %v259_v55 }
  0x2e PF: > { %s11_s8 = sadd.s32 1, %s410_s8   ;;  %s538_s6 = smov %s406_s7 }
  0x2f   : > { %p8_p5 = scmp.ge.s32.totalorder %s11_s8, 10   ;;  %s539_s7 = smov %s541_s9 }
  0x31   :  { %10 = sbr.rel (!%p8_p5) target bundleno = 2 (0x2), region = 55 }

</bundles_post_ra>
